<compile_context>
chip_gen: v7x
topology: tpu7x:2x2x1
jax: 0.10.0
libtpu: 0.0.40
codegen_flags: <defaults>
</compile_context>

<pallas_src>
import math
from functools import partial

import jax
import jax.numpy as jnp
from jax.experimental import pallas as pl
from jax.experimental.pallas import tpu as pltpu


_LAYER_KEYS = ('wqkv', 'bqkv', 'wo', 'bo', 'g1', 'be1',
               'w1', 'b1', 'w2', 'b2', 'g2', 'be2')


# ----------------------------------------------------------------------------
# Pallas kernels
# ----------------------------------------------------------------------------

def conv_matmul_kernel(x_ref, w_ref, b_ref, o_ref):
    """o = x @ w + b   (im2col'd Conv1d; x/w bf16, f32 accumulate)."""
    o_ref[...] = (
        jnp.dot(x_ref[...], w_ref[...], preferred_element_type=jnp.float32)
        + b_ref[...])


def fused_exit_stack_kernel(
        x_ref, pe_ref,
        wqkv_ref, bqkv_ref, wo_ref, bo_ref,
        g1_ref, be1_ref, w1_ref, b1_ref, w2_ref, b2_ref, g2_ref, be2_ref,
        lw_ref, lb_ref,
        out_ref,
        h_sc,
        *, n_head, n_layers_per_exit, vocab):
    """Grid = (batch, n_exits*n_layers).  One grid step == one post-LN
    transformer encoder layer for one sequence.  Activations (T, D) are
    carried across layers in VMEM scratch h_sc (re-initialized at l==0 for
    each sequence, with the positional-encoding add fused in).  At the last
    layer of each exit, the exit's Linear + log_softmax head is applied and
    written to the lane-padded output block."""
    l = pl.program_id(1)

    @pl.when(l == 0)
    def _():
        h_sc[...] = x_ref[0] + pe_ref[...]   # PE add fused into the prologue

    f32, bf16 = jnp.float32, jnp.bfloat16
    T, D = h_sc.shape
    H = n_head
    dh = D // H
    scale = 1.0 / math.sqrt(dh)

    x = h_sc[...]                      # (T, D) f32
    x16 = x.astype(bf16)

    # ---- Fused QKV projection: single full-width (T,D)x(D,3D) MXU matmul ---
    qkv = jnp.dot(x16, wqkv_ref[0], preferred_element_type=f32) + bqkv_ref[0]
    qkv16 = qkv.astype(bf16)           # cast once, reused by every head

    dn_qkT = (((1,), (1,)), ((), ()))  # (T,dh) x (T,dh) -> (T,T)   (A @ B^T)

    # ---- Per-head score / softmax / context --------------------------------
    # TODO(synk): at realistic T this should be a blocked online-softmax
    # (flash-style); H is small so a static head loop is acceptable here.
    ctx_parts = []
    for h in range(H):
        qh = qkv16[:, h * dh:(h + 1) * dh]
        kh = qkv16[:, D + h * dh:D + (h + 1) * dh]
        vh = qkv16[:, 2 * D + h * dh:2 * D + (h + 1) * dh]
        s = jax.lax.dot_general(qh, kh, dn_qkT,
                                preferred_element_type=f32) * scale   # (T,T)
        s = s - jnp.max(s, axis=-1, keepdims=True)
        p = jnp.exp(s)
        p = p * pl.reciprocal(jnp.sum(p, axis=-1, keepdims=True), approx=True)
        ctx_parts.append(jnp.dot(p.astype(bf16), vh,
                                 preferred_element_type=f32))         # (T,dh)

    # Concatenate heads -> (T, D); single (T,D)x(D,D) output projection.
    ctx16 = jnp.concatenate(ctx_parts, axis=-1).astype(bf16)
    attn = jnp.dot(ctx16, wo_ref[0], preferred_element_type=f32) + bo_ref[0]

    # ---- Add & LayerNorm 1 --------------------------------------------------
    y = x + attn
    mu = jnp.mean(y, axis=-1, keepdims=True)
    var = jnp.mean((y - mu) ** 2, axis=-1, keepdims=True)
    y = (y - mu) * jax.lax.rsqrt(var + 1e-5) * g1_ref[0] + be1_ref[0]

    # ---- Feed-forward (ReLU) ------------------------------------------------
    h1 = jnp.dot(y.astype(bf16), w1_ref[0],
                 preferred_element_type=f32) + b1_ref[0]
    h1 = jnp.maximum(h1, 0.0)
    ff = jnp.dot(h1.astype(bf16), w2_ref[0],
                 preferred_element_type=f32) + b2_ref[0]

    # ---- Add & LayerNorm 2 --------------------------------------------------
    z = y + ff
    mu2 = jnp.mean(z, axis=-1, keepdims=True)
    var2 = jnp.mean((z - mu2) ** 2, axis=-1, keepdims=True)
    z = (z - mu2) * jax.lax.rsqrt(var2 + 1e-5) * g2_ref[0] + be2_ref[0]

    h_sc[...] = z

    # ---- Exit head: Linear + exact log_softmax at last layer of each exit --
    @pl.when(l % n_layers_per_exit == n_layers_per_exit - 1)
    def _():
        # TODO(synk): at realistic d_model/vocab, vocab-tile this head
        # (two-pass logsumexp), emit bf16 log-probs, and DMA the head weight
        # manually inside this pl.when to fit v7x's 64 MiB VMEM.
        logits = jnp.dot(z.astype(bf16), lw_ref[0],
                         preferred_element_type=f32) + lb_ref[0]      # (T,Vp)
        col = jax.lax.broadcasted_iota(jnp.int32, logits.shape, 1)
        logits = jnp.where(col < vocab, logits, -1e30)  # mask padded lanes
        m = jnp.max(logits, axis=-1, keepdims=True)
        sh = logits - m
        lse = jnp.log(jnp.sum(jnp.exp(sh), axis=-1, keepdims=True))
        out_ref[0, 0] = sh - lse


# ----------------------------------------------------------------------------
# Pallas wrappers
# ----------------------------------------------------------------------------

def pallas_conv_matmul(cols, w, b):
    """Im2col'd Conv1d as an M-tiled matmul (parallel grid when M allows)."""
    M, K = cols.shape
    N = w.shape[1]
    tm = M
    for cand in (512, 256, 128):
        if M % cand == 0:
            tm = cand
            break
    # TODO(synk): at ASR scale also tile K ("arbitrary" axis) and lane-tile N.
    return pl.pallas_call(
        conv_matmul_kernel,
        out_shape=jax.ShapeDtypeStruct((M, N), jnp.float32),
        grid=(M // tm,),
        in_specs=[pl.BlockSpec((tm, K), lambda i: (i, 0)),
                  pl.BlockSpec((K, N), lambda i: (0, 0)),
                  pl.BlockSpec((1, N), lambda i: (0, 0))],
        out_specs=pl.BlockSpec((tm, N), lambda i: (i, 0)),
        compiler_params=pltpu.CompilerParams(
            dimension_semantics=("parallel",),
            vmem_limit_bytes=48 * 1024 * 1024),
    )(cols, w, b)


def fused_early_exit_stack(x_btd, pe_td, stacked, head_w, head_b, *,
                           n_head, n_layers, n_exits, vocab, vocab_pad):
    """Runs ALL encoder layers of ALL exits plus their heads in one kernel.
    Grid: (batch [parallel], n_exits*n_layers [arbitrary])."""
    B, T, D = x_btd.shape
    total_layers = n_exits * n_layers

    def layer_spec(arr):
        blk = (1,) + arr.shape[1:]
        nd = arr.ndim
        return pl.BlockSpec(blk, lambda b, l, nd=nd: (l,) + (0,) * (nd - 1))

    def head_spec(arr):
        blk = (1,) + arr.shape[1:]
        nd = arr.ndim
        return pl.BlockSpec(
            blk, lambda b, l, nd=nd: (l // n_layers,) + (0,) * (nd - 1))

    in_specs = [pl.BlockSpec((1, T, D), lambda b, l: (b, 0, 0)),
                pl.BlockSpec((T, D), lambda b, l: (0, 0))]
    in_specs += [layer_spec(stacked[k]) for k in _LAYER_KEYS]
    in_specs += [head_spec(head_w), head_spec(head_b)]

    out_spec = pl.BlockSpec((1, 1, T, vocab_pad),
                            lambda b, l: (l // n_layers, b, 0, 0))

    kernel = partial(fused_exit_stack_kernel, n_head=n_head,
                     n_layers_per_exit=n_layers, vocab=vocab)

    return pl.pallas_call(
        kernel,
        out_shape=jax.ShapeDtypeStruct((n_exits, B, T, vocab_pad),
                                       jnp.float32),
        grid=(B, total_layers),
        in_specs=in_specs,
        out_specs=out_spec,
        scratch_shapes=[pltpu.VMEM((T, D), jnp.float32)],   # activation carry
        compiler_params=pltpu.CompilerParams(
            dimension_semantics=("parallel", "arbitrary"),
            vmem_limit_bytes=48 * 1024 * 1024),
    )(x_btd, pe_td, *[stacked[k] for k in _LAYER_KEYS], head_w, head_b)


# ----------------------------------------------------------------------------
# Glue (im2col, positional encoding, param init / packing, full forward)
# ----------------------------------------------------------------------------

def im2col_time(x_btc, k=3, stride=2):
    """x_btc: (B, T, C) channels-last.  Returns ((B*T_out, C*k) bf16, T_out)
    with channel-major / kernel-minor flattening, matching a PyTorch Conv1d
    weight (C_out, C_in, k) flattened to (C_in*k,)."""
    B, T, C = x_btc.shape
    T_out = (T - k) // stride + 1
    idx = jnp.arange(T_out)[:, None] * stride + jnp.arange(k)[None, :]
    patches = x_btc[:, idx, :]                       # (B, T_out, k, C)
    patches = jnp.transpose(patches, (0, 1, 3, 2))   # (B, T_out, C, k)
    # TODO(synk): at ASR scale, move this window gather into the conv kernel
    # with strided pl.ds loads to avoid tripling HBM traffic.
    return patches.reshape(B * T_out, C * k).astype(jnp.bfloat16), T_out


def _conv_w2d(w):
    """(C_out, C_in, k) torch Conv1d weight -> (C_in*k, C_out) bf16."""
    return jnp.transpose(w.reshape(w.shape[0], -1)).astype(jnp.bfloat16)


def make_positional_encoding(max_len, d_model):
    pos = jnp.arange(max_len, dtype=jnp.float32)[:, None]
    i = jnp.arange(0, d_model, 2, dtype=jnp.float32)[None, :]
    angle = pos / jnp.power(10000.0, i / float(d_model))
    pe = jnp.zeros((max_len, d_model), jnp.float32)
    pe = pe.at[:, 0::2].set(jnp.sin(angle))
    pe = pe.at[:, 1::2].set(jnp.cos(angle))
    return pe[None]                                  # (1, max_len, d_model)


def pack_encoder_params(exits, d_model, d_ff, dec_voc_size, vocab_pad):
    """Stack per-layer params over (n_exits*n_layers) in kernel layout:
    fused (D,3D) bf16 QKV weight + (1,3D) bias, (D,D) bf16 output proj,
    bf16 FFN weights, exit heads lane-padded to vocab_pad."""
    bf16 = jnp.bfloat16
    acc = {k: [] for k in _LAYER_KEYS}
    for ex in exits:
        for lp in ex['layers']:
            wqkv = jnp.concatenate([lp['wq'], lp['wk'], lp['wv']], axis=1)
            bqkv = jnp.concatenate([lp['bq'], lp['bk'], lp['bv']], axis=1)
            acc['wqkv'].append(wqkv.astype(bf16))
            acc['bqkv'].append(bqkv.reshape(1, 3 * d_model))
            acc['wo'].append(lp['wo'].astype(bf16))
            acc['bo'].append(lp['bo'].reshape(1, d_model))
            acc['g1'].append(lp['g1'].reshape(1, d_model))
            acc['be1'].append(lp['be1'].reshape(1, d_model))
            acc['w1'].append(lp['w1'].astype(bf16))
            acc['b1'].append(lp['b1'].reshape(1, d_ff))
            acc['w2'].append(lp['w2'].astype(bf16))
            acc['b2'].append(lp['b2'].reshape(1, d_model))
            acc['g2'].append(lp['g2'].reshape(1, d_model))
            acc['be2'].append(lp['be2'].reshape(1, d_model))
    stacked = {k: jnp.stack(v) for k, v in acc.items()}
    pad = vocab_pad - dec_voc_size
    head_w = jnp.stack([jnp.pad(ex['lin_w'], ((0, 0), (0, pad))).astype(bf16)
                        for ex in exits])
    head_b = jnp.stack([jnp.pad(ex['lin_b'].reshape(1, -1), ((0, 0), (0, pad)))
                        for ex in exits])
    return stacked, head_w, head_b


def init_params(key, features_length, d_model, n_head, d_ff, n_layers,
                n_exits, dec_voc_size, max_len):
    keys = iter(jax.random.split(key, 512))

    def nrm(shape, scale=0.02):
        return scale * jax.random.normal(next(keys), shape, jnp.float32)

    # Conv weights pre-packed (transpose + bf16 cast hoisted out of forward).
    conv = []
    c_in = features_length
    for _ in range(2):
        w = nrm((d_model, c_in, 3), 0.1)
        b = nrm((d_model,), 0.1)
        conv.append((_conv_w2d(w), b.reshape(1, -1)))
        c_in = d_model

    exits = []
    for _ in range(n_exits):
        layers = []
        for _ in range(n_layers):
            layers.append(dict(
                wq=nrm((d_model, d_model)), bq=nrm((1, d_model)),
                wk=nrm((d_model, d_model)), bk=nrm((1, d_model)),
                wv=nrm((d_model, d_model)), bv=nrm((1, d_model)),
                wo=nrm((d_model, d_model)), bo=nrm((1, d_model)),
                g1=jnp.ones((1, d_model), jnp.float32),
                be1=jnp.zeros((1, d_model), jnp.float32),
                w1=nrm((d_model, d_ff)), b1=nrm((1, d_ff)),
                w2=nrm((d_ff, d_model)), b2=nrm((1, d_model)),
                g2=jnp.ones((1, d_model), jnp.float32),
                be2=jnp.zeros((1, d_model), jnp.float32),
            ))
        exits.append(dict(layers=layers,
                          lin_w=nrm((d_model, dec_voc_size)),
                          lin_b=nrm((1, dec_voc_size))))

    vocab_pad = ((dec_voc_size + 127) // 128) * 128   # lane-dense exit output
    stacked, head_w, head_b = pack_encoder_params(
        exits, d_model, d_ff, dec_voc_size, vocab_pad)

    return dict(conv=conv, stacked=stacked, head_w=head_w, head_b=head_b,
                pe=make_positional_encoding(max_len, d_model),
                n_head=n_head, n_layers=n_layers, n_exits=n_exits,
                d_model=d_model, dec_voc_size=dec_voc_size,
                vocab_pad=vocab_pad)


def early_encoder_forward(src, params):
    """src: (B, features_length, T) -- the layout PyTorch Conv1d expects.
    Returns (n_enc_exits, B, T_sub, dec_voc_size) of log-probabilities."""
    B = src.shape[0]
    D = params['d_model']
    V = params['dec_voc_size']
    Vp = params['vocab_pad']
    n_exits, n_layers = params['n_exits'], params['n_layers']

    # ---- Conv1dSubampling (im2col + tiled Pallas matmul), no activation ----
    x = jnp.transpose(src, (0, 2, 1))                  # (B, T, C)
    (w0, b0), (w1, b1) = params['conv']
    cols, t1 = im2col_time(x, k=3, stride=2)
    x = pallas_conv_matmul(cols, w0, b0).reshape(B, t1, D)

    cols, t2 = im2col_time(x, k=3, stride=2)
    x = pallas_conv_matmul(cols, w1, b1).reshape(B, t2, D)

    # ---- Fused early-exit encoder stack (PE add fused into layer 0) --------
    pe = params['pe'][0, :t2, :]                       # (t2, D)
    out = fused_early_exit_stack(
        x, pe, params['stacked'], params['head_w'], params['head_b'],
        n_head=params['n_head'], n_layers=n_layers, n_exits=n_exits,
        vocab=V, vocab_pad=Vp)

    return out[..., :V]                                # (n_exits, B, T_sub, V)


# ----------------------------------------------------------------------------
# Demo
# ----------------------------------------------------------------------------

if __name__ == "__main__":
    B, features_length, T = 2, 8, 30
    d_model, n_head, d_ff = 32, 4, 64
    n_enc_layers, n_enc_exits = 2, 2
    dec_voc_size, max_len = 40, 64

    key = jax.random.PRNGKey(0)
    k_src, k_par = jax.random.split(key)
    src = jax.random.normal(k_src, (B, features_length, T), jnp.float32)

    params = init_params(k_par, features_length, d_model, n_head, d_ff,
                         n_enc_layers, n_enc_exits, dec_voc_size, max_len)

    out = early_encoder_forward(src, params)
    out = jax.block_until_ready(out)

    # After two stride-2, k=3, pad=0 convs: T 30 -> 14 -> 6.
    assert out.shape == (n_enc_exits, B, 6, dec_voc_size), out.shape
    assert bool(jnp.all(jnp.isfinite(out)))
    print("KERNEL_OK")
</pallas_src>

<mosaic_0001>
module attributes {stable_mosaic.version = 11 : i64} {
  func.func @conv_matmul_kernel(%arg0: i32, %arg1: memref<28x24xbf16, #tpu.memory_space<vmem>>, %arg2: memref<24x32xbf16, #tpu.memory_space<vmem>>, %arg3: memref<1x32xf32, #tpu.memory_space<vmem>>, %arg4: memref<28x32xf32, #tpu.memory_space<vmem>>) attributes {dimension_semantics = [#tpu.dimension_semantics<parallel>], iteration_bounds = array<i64: 1>, scalar_prefetch = 0 : i64, scratch_operands = 0 : i64, tpu.core_type = #tpu.core_type<tc>, window_params = [{transform_indices = @transform_0, window_bounds = array<i64: 28, 24>}, {pipeline_mode = #tpu.pipeline_mode<synchronous>, transform_indices = @transform_1, window_bounds = array<i64: 24, 32>}, {pipeline_mode = #tpu.pipeline_mode<synchronous>, transform_indices = @transform_2, window_bounds = array<i64: 1, 32>}, {transform_indices = @transform_3, window_bounds = array<i64: 28, 32>}]} {
    %c0 = arith.constant 0 : index
    %c0_0 = arith.constant 0 : index
    %0 = vector.load %arg1[%c0, %c0_0] : memref<28x24xbf16, #tpu.memory_space<vmem>>, vector<28x24xbf16>
    %c0_1 = arith.constant 0 : index
    %c0_2 = arith.constant 0 : index
    %1 = vector.load %arg2[%c0_1, %c0_2] : memref<24x32xbf16, #tpu.memory_space<vmem>>, vector<24x32xbf16>
    %cst = arith.constant dense<0.000000e+00> : vector<28x32xf32>
    %2 = tpu.matmul %0, %1, %cst {dimension_numbers = #tpu.dot_dimension_numbers<[1], [0], [0], [1], [0, 0, 1, 1], [], []>} : vector<28x24xbf16>, vector<24x32xbf16>, vector<28x32xf32> -> vector<28x32xf32>
    %c0_3 = arith.constant 0 : index
    %c0_4 = arith.constant 0 : index
    %3 = vector.load %arg3[%c0_3, %c0_4] : memref<1x32xf32, #tpu.memory_space<vmem>>, vector<1x32xf32>
    %4 = vector.broadcast %3 : vector<1x32xf32> to vector<28x32xf32>
    %5 = arith.addf %2, %4 : vector<28x32xf32>
    %c0_5 = arith.constant 0 : index
    %c0_6 = arith.constant 0 : index
    %6 = vector.load %arg4[%c0_5, %c0_6] : memref<28x32xf32, #tpu.memory_space<vmem>>, vector<28x32xf32>
    tpu.vector_store %arg4[%c0_5, %c0_6], %5 {strides = array<i32>} : memref<28x32xf32, #tpu.memory_space<vmem>>, vector<28x32xf32>,
    return
  }
  func.func @transform_0(%arg0: i32) -> (i32, i32) {
    %c0_i32 = arith.constant 0 : i32
    %c0_i32_0 = arith.constant 0 : i32
    return %arg0, %c0_i32 : i32, i32
  }
  func.func @transform_1(%arg0: i32) -> (i32, i32) {
    %c0_i32 = arith.constant 0 : i32
    %c0_i32_0 = arith.constant 0 : i32
    %c0_i32_1 = arith.constant 0 : i32
    return %c0_i32, %c0_i32_0 : i32, i32
  }
  func.func @transform_2(%arg0: i32) -> (i32, i32) {
    %c0_i32 = arith.constant 0 : i32
    %c0_i32_0 = arith.constant 0 : i32
    %c0_i32_1 = arith.constant 0 : i32
    return %c0_i32, %c0_i32_0 : i32, i32
  }
  func.func @transform_3(%arg0: i32) -> (i32, i32) {
    %c0_i32 = arith.constant 0 : i32
    %c0_i32_0 = arith.constant 0 : i32
    return %arg0, %c0_i32 : i32, i32
  }
}

</mosaic_0001>

<bundles_post_ra>
// kernel: tpu_custom_call.1
= control target key start
LH: loop header
LB: loop body
LE: loop exit
PB: predicated region body
PF: predicated region fallthrough
CT: control target
= control target key end

     0   :  { %vm56_vm0 = vcmask 1043456   ;;  %vm49_vm1 = vcmask 195584   ;;  %s232_s0 = inlined_call_operand.vmem [shape: bf16[28,24], index: 0, kind: input, shape index: {}]   ;;  %s233_s1 = inlined_call_operand.vmem [shape: bf16[24,32], index: 1, kind: input, shape index: {}]   ;;  %s234_s2 = inlined_call_operand.vmem [shape: f32[1,32], index: 2, kind: input, shape index: {}]   ;;  %s235_s3 = inlined_call_operand.hbm [shape: f32[28,32], index: 3, kind: output, shape index: {}]  }
   0x1   :  { %v154_v0 = vld [vmem:[%s233_s1] sm:$0xff]   ;;  %v155_v1 = vld [vmem:[%s233_s1 + $0x8] ss:$0 sps:$4 sm:$0xff]  }
   0x2   :  { %142 = vmatprep.subr.bf16.mxu0 %v154_v0  ;;  %v156_v2 = vld [vmem:[%s232_s0] sm:$0xff]   ;;  %v58_v3 = vsel %vm56_vm0, %v155_v1, 0 }
   0x3   :  { %143 = vmatpush3.bf16.msra.mxu0 %v154_v0  ;;  %146 = vmatprep.mubr.msk.bf16.mxu0 %vm49_vm1, %v156_v2 }
   0x4   :  { %150 = vmatprep.subr.msk.bf16.mxu0 %vm56_vm0, %v155_v1 }
   0x5   :  { %8 = vsyncpa [#allocation3], 0  ;;  %v157_v4 = vld [vmem:[%s232_s0 + $0x8] sm:$0x3f]   ;;  %v131_v5 = vld [vmem:[%s234_s2] ss:$0 sm:$0xff] }
   0x6   :  { %vm109_vm2 = vcmask 261120   ;;  %s182_s1 = smov [#allocation2]   ;;  %vm113_vm3 = vcmask 257024  }
   0x7   :  { %145 = vmatpush3.bf16.msra.mxu0 %v58_v3  ;;  %s120_s22 = sshll.u32 %s182_s1, 4  ;;  %s121_s22 = int_to_ptr.vmem [resolvable:$true] %s120_s22 }
   0x8   :  { %s158_s0 = scalar_lea.vmem %s121_s22, 512  ;;  %p163_p1 = scmp.lt.s32.totalorder %s121_s22, %s121_s22 }
   0x9   :  { %p159_p0 = scmp.ne.s32.totalorder %s121_s22, %s158_s0  ;;  %p164_p2 = scmp.lt.s32.totalorder %s158_s0, %s158_s0 }
   0xa   :  { %147 = vmatmul.mubr.msk.bf16.vlgmr.msra.gmra.mrb[0].mxu0 %vm49_vm1, %v157_v4 }
   0xb   :  { %p165_p3 = por %p164_p2, %p163_p1 }
   0xd   :  { %p166_p4 = pnand %p165_p3, %p159_p0 }
  0xdd   :  { %v148_v6 = vpop.f32.mrb[0].mxu0 }
  0xde   :  { %v103_v7 = vadd.f32 %v148_v6, %v131_v5  ;;  %v94_v8 = vpop.f32.mrb[1].mxu0 }
  0xdf   :  { %v95_v9 = vadd.f32 %v131_v5, %v94_v8  ;;  %v149_v10 = vpop.f32.mrb[2].mxu0 }
  0xe0   :  { %112 = vst.msk [vmem:[#allocation2 + $0x10] sm:$0xff] %vm109_vm2, %v103_v7  ;;  %v106_v11 = vadd.f32 %v149_v10, %v131_v5  ;;  %v97_v12 = vpop.f32.mrb[3].mxu0 }
  0xe1   :  { %110 = vst.msk [vmem:[#allocation2] sm:$0xff] %vm109_vm2, %v95_v9  ;;  %v98_v13 = vadd.f32 %v131_v5, %v97_v12 }
  0xe2   :  { %114 = vst.msk [vmem:[#allocation2 + $0x18] sm:$0xf] %vm113_vm3, %v106_v11 }
  0xe3   :  { %111 = vst.msk [vmem:[#allocation2 + $0x8] sm:$0xff] %vm109_vm2, %v98_v13 }
  0xe4   :  { %169 = shalt.err (!%p166_p4)
}
  0xe5   :  { %s170_s24 = scalar_lea.hbm %s235_s3, 512 }
  0xe6   :  { %p171_p5 = scmp.ne.s32.totalorder %s235_s3, %s170_s24  ;;  %p174_p6 = scmp.lt.u32.totalorder %s170_s24, %s235_s3 }
  0xe8   :  { %p176_p7 = pnand %p174_p6, %p171_p5 }
  0xea   :  { %179 = shalt.err (!%p176_p7)
}
  0xeb   :  { %s183_s29 = smov 128   ;;  %s184_s30 = smov 8  }
  0xec   :  { %126 = dma.vmem_to_hbm [thread:$0]  %s121_s22, 512, %s235_s3, [#allocation3], %s183_s29, %s183_s29, %s184_s30  }
  0xed   :  { %180 = dma.done.wait [#allocation3], 512  }
  0xee   :  { %181 = vsyncadd [#allocation3], 4294966784 }
  0xef   :  { %130 = vsyncpa [#allocation3], 1 }

</bundles_post_ra>
